<compile_context>
chip_gen: v7x
topology: tpu7x:2x2x1
jax: 0.10.0
libtpu: 0.0.40
codegen_flags: <defaults>
</compile_context>

<pallas_src>
import functools

import jax
import jax.numpy as jnp
from jax.experimental import pallas as pl
from jax.experimental.pallas import tpu as pltpu

# Real (unpadded) layer sizes, stored as (in, out) so the kernel computes h @ W + b.
LAYER_DIMS = [(784, 128), (128, 64), (64, 32), (32, 64), (64, 128), (128, 784)]
RELU_LAYERS = (0, 1, 3, 4)   # ReLU after these layers; layer 2 = latent, layer 5 = sigmoid
D_IN = 784                   # input / output feature width (kept unpadded end-to-end)
H_PAD = 128                  # all hidden dims padded up to one full lane group


def _cdiv(a, b):
    return -(-a // b)


def _rup(n, m):
    return _cdiv(n, m) * m


def _ae_kernel(x_ref, w_in_ref, w_mid_ref, w_out_ref, b_mid_ref, b_out_ref, out_ref):
    """Whole autoencoder forward for one (tm, 784) batch tile."""
    # Layer 0: 784 -> 128, ReLU.  Cast the f32 input tile to bf16 in-kernel
    # (fused, no separate pad/astype pass); f32 accumulation on the MXU.
    x = x_ref[...].astype(jnp.bfloat16)
    h = jnp.dot(x, w_in_ref[...], preferred_element_type=jnp.float32) + b_mid_ref[0]
    h = jnp.maximum(h, 0.0)

    # Layers 1..4 (all padded to 128->128).  li == 1 is AutoEncoder_V_3's 64->32
    # latent layer and has NO activation; the others use ReLU.  Zero padding of
    # the unused rows/cols keeps the math exact.
    for li in range(4):
        h = jnp.dot(h.astype(jnp.bfloat16), w_mid_ref[li],
                    preferred_element_type=jnp.float32) + b_mid_ref[li + 1]
        if li != 1:
            h = jnp.maximum(h, 0.0)

    # Layer 5: 128 -> 784, Sigmoid.  sigmoid(h) = 0.5*(tanh(0.5*h)+1): a single
    # EUP transcendental per element, no exp overflow / reciprocal-of-inf path.
    h = jnp.dot(h.astype(jnp.bfloat16), w_out_ref[...],
                preferred_element_type=jnp.float32) + b_out_ref[...]
    out_ref[...] = (0.5 * (jnp.tanh(0.5 * h) + 1.0)).astype(out_ref.dtype)


def init_params(key):
    """PyTorch-style nn.Linear init: U(-1/sqrt(fan_in), 1/sqrt(fan_in)), stored (in, out)."""
    params = []
    for din, dout in LAYER_DIMS:
        key, kw, kb = jax.random.split(key, 3)
        bound = 1.0 / jnp.sqrt(jnp.float32(din))
        w = jax.random.uniform(kw, (din, dout), jnp.float32, -bound, bound)
        b = jax.random.uniform(kb, (dout,), jnp.float32, -bound, bound)
        params.append((w, b))
    return params


def pack_params(params):
    """Pad hidden dims to 128, cast weights to bf16, and fold the 12 per-layer
    arrays into 5 block-invariant kernel inputs.  The 784-wide input and output
    weights stay unpadded so the kernel's HBM tiles are (tm, 784)."""
    (w0, b0), (w1, b1), (w2, b2), (w3, b3), (w4, b4), (w5, b5) = params

    def pad_w(w, rows, cols):
        return jnp.pad(w, ((0, rows - w.shape[0]), (0, cols - w.shape[1])))

    def pad_b(b, cols):
        return jnp.pad(b, (0, cols - b.shape[0]))

    w_in = w0.astype(jnp.bfloat16)                                            # (784, 128)
    w_mid = jnp.stack([pad_w(w, H_PAD, H_PAD) for w in (w1, w2, w3, w4)]
                      ).astype(jnp.bfloat16)                                  # (4, 128, 128)
    w_out = w5.astype(jnp.bfloat16)                                           # (128, 784)
    b_mid = jnp.stack([pad_b(b, H_PAD) for b in (b0, b1, b2, b3, b4)]
                      ).reshape(5, 1, H_PAD).astype(jnp.float32)              # (5, 1, 128)
    b_out = b5.reshape(1, D_IN).astype(jnp.float32)                           # (1, 784)
    return (w_in, w_mid, w_out, b_mid, b_out)


def _choose_tiling(B, tm):
    """Pick (steps, tm_eff, Bp) so padding stays small and v7x's two TensorCores
    both get work for reasonably sized batches."""
    steps = _cdiv(B, tm)
    if B >= 256:
        steps = max(steps, 2)          # "parallel" axis shards across both v7x TCs
    tm_eff = _rup(_cdiv(B, steps), 8)  # f32 sublane alignment; keeps pad < one step
    Bp = steps * tm_eff
    return steps, tm_eff, Bp


@functools.partial(jax.jit, static_argnames=("tm",))
def autoencoder_forward(x, packed, *, tm=1024):
    """x: (B, 784) f32.  Returns (B, 784) f32 reconstruction."""
    w_in, w_mid, w_out, b_mid, b_out = packed
    B, D = x.shape
    assert D == D_IN

    steps, tm_eff, Bp = _choose_tiling(B, tm)

    # Only pad batch rows (no feature pad, no dtype cast — both fused into the
    # kernel).  When Bp == B this is a no-op XLA elides.
    xp = jnp.pad(x, ((0, Bp - B), (0, 0)))

    out = pl.pallas_call(
        _ae_kernel,
        out_shape=jax.ShapeDtypeStruct((Bp, D_IN), x.dtype),
        grid_spec=pltpu.PrefetchScalarGridSpec(
            num_scalar_prefetch=0,
            grid=(steps,),
            in_specs=[
                pl.BlockSpec((tm_eff, D_IN), lambda i: (i, 0)),         # x batch tile (f32)
                pl.BlockSpec((D_IN, H_PAD), lambda i: (0, 0)),          # w_in  (block-invariant)
                pl.BlockSpec((4, H_PAD, H_PAD), lambda i: (0, 0, 0)),   # w_mid stack
                pl.BlockSpec((H_PAD, D_IN), lambda i: (0, 0)),          # w_out
                pl.BlockSpec((5, 1, H_PAD), lambda i: (0, 0, 0)),       # b_mid stack
                pl.BlockSpec((1, D_IN), lambda i: (0, 0)),              # b_out
            ],
            out_specs=pl.BlockSpec((tm_eff, D_IN), lambda i: (i, 0)),   # unpadded output tile
        ),
        compiler_params=pltpu.CompilerParams(
            dimension_semantics=("parallel",),
            vmem_limit_bytes=48 * 1024 * 1024,   # tm=1024..2048 fits on v5e/v6e/v7x
        ),
    )(xp, w_in, w_mid, w_out, b_mid, b_out)

    # Only the (rare, small) batch-row padding is trimmed; no column slice.
    return out[:B] if Bp != B else out


def reference_forward(x, params):
    """Pure-JAX reference with the same bf16-operand / f32-accumulate numerics."""
    h = x
    for li, (w, b) in enumerate(params):
        h = jnp.dot(h.astype(jnp.bfloat16), w.astype(jnp.bfloat16),
                    preferred_element_type=jnp.float32) + b
        if li in RELU_LAYERS:
            h = jnp.maximum(h, 0.0)
        elif li == len(params) - 1:
            h = jax.nn.sigmoid(h)
    return h


if __name__ == "__main__":
    key = jax.random.PRNGKey(0)
    kx, kp = jax.random.split(key)

    B = 32                                   # small demo batch (tiled/padded by wrapper)
    x = jax.random.uniform(kx, (B, D_IN), jnp.float32)

    params = init_params(kp)
    packed = pack_params(params)

    out = autoencoder_forward(x, packed)
    out = jax.block_until_ready(out)

    ref = reference_forward(x, params)
    assert out.shape == (B, D_IN)
    err = float(jnp.max(jnp.abs(out - ref)))
    # bf16 matmul operands (kernel & reference) -> loose tolerance.
    assert err < 2e-2, err
    print("KERNEL_OK")
</pallas_src>

<mosaic_0001>
module attributes {stable_mosaic.version = 11 : i64} {
  func.func @_ae_kernel(%arg0: i32, %arg1: memref<32x784xf32, #tpu.memory_space<vmem>>, %arg2: memref<784x128xbf16, #tpu.memory_space<vmem>>, %arg3: memref<4x128x128xbf16, #tpu.memory_space<vmem>>, %arg4: memref<128x784xbf16, #tpu.memory_space<vmem>>, %arg5: memref<5x1x128xf32, #tpu.memory_space<vmem>>, %arg6: memref<1x784xf32, #tpu.memory_space<vmem>>, %arg7: memref<32x784xf32, #tpu.memory_space<vmem>>) attributes {dimension_semantics = [#tpu.dimension_semantics<parallel>], iteration_bounds = array<i64: 1>, scalar_prefetch = 0 : i64, scratch_operands = 0 : i64, tpu.core_type = #tpu.core_type<tc>, window_params = [{transform_indices = @transform_0, window_bounds = array<i64: 32, 784>}, {pipeline_mode = #tpu.pipeline_mode<synchronous>, transform_indices = @transform_1, window_bounds = array<i64: 784, 128>}, {pipeline_mode = #tpu.pipeline_mode<synchronous>, transform_indices = @transform_2, window_bounds = array<i64: 4, 128, 128>}, {pipeline_mode = #tpu.pipeline_mode<synchronous>, transform_indices = @transform_3, window_bounds = array<i64: 128, 784>}, {pipeline_mode = #tpu.pipeline_mode<synchronous>, transform_indices = @transform_4, window_bounds = array<i64: 5, 1, 128>}, {pipeline_mode = #tpu.pipeline_mode<synchronous>, transform_indices = @transform_5, window_bounds = array<i64: 1, 784>}, {transform_indices = @transform_6, window_bounds = array<i64: 32, 784>}]} {
    %c0 = arith.constant 0 : index
    %c0_0 = arith.constant 0 : index
    %0 = vector.load %arg1[%c0, %c0_0] : memref<32x784xf32, #tpu.memory_space<vmem>>, vector<32x784xf32>
    %1 = arith.truncf %0 : vector<32x784xf32> to vector<32x784xbf16>
    %c0_1 = arith.constant 0 : index
    %c0_2 = arith.constant 0 : index
    %2 = vector.load %arg2[%c0_1, %c0_2] : memref<784x128xbf16, #tpu.memory_space<vmem>>, vector<784x128xbf16>
    %cst = arith.constant dense<0.000000e+00> : vector<32x128xf32>
    %3 = tpu.matmul %1, %2, %cst {dimension_numbers = #tpu.dot_dimension_numbers<[1], [0], [0], [1], [0, 0, 1, 1], [], []>} : vector<32x784xbf16>, vector<784x128xbf16>, vector<32x128xf32> -> vector<32x128xf32>
    %c0_3 = arith.constant 0 : index
    %c0_4 = arith.constant 0 : index
    %c0_5 = arith.constant 0 : index
    %4 = vector.load %arg5[%c0_3, %c0_4, %c0_5] : memref<5x1x128xf32, #tpu.memory_space<vmem>>, vector<1x1x128xf32>
    %5 = vector.shape_cast %4 : vector<1x1x128xf32> to vector<1x128xf32>
    %6 = vector.broadcast %5 : vector<1x128xf32> to vector<32x128xf32>
    %7 = arith.addf %3, %6 : vector<32x128xf32>
    %cst_6 = arith.constant 0.000000e+00 : f32
    %8 = vector.broadcast %cst_6 : f32 to vector<32x128xf32>
    %9 = arith.maximumf %7, %8 : vector<32x128xf32>
    %10 = arith.truncf %9 : vector<32x128xf32> to vector<32x128xbf16>
    %c0_7 = arith.constant 0 : index
    %c0_8 = arith.constant 0 : index
    %c0_9 = arith.constant 0 : index
    %11 = vector.load %arg3[%c0_7, %c0_8, %c0_9] : memref<4x128x128xbf16, #tpu.memory_space<vmem>>, vector<1x128x128xbf16>
    %12 = vector.shape_cast %11 : vector<1x128x128xbf16> to vector<128x128xbf16>
    %cst_10 = arith.constant dense<0.000000e+00> : vector<32x128xf32>
    %13 = tpu.matmul %10, %12, %cst_10 {dimension_numbers = #tpu.dot_dimension_numbers<[1], [0], [0], [1], [0, 0, 1, 1], [], []>} : vector<32x128xbf16>, vector<128x128xbf16>, vector<32x128xf32> -> vector<32x128xf32>
    %c1 = arith.constant 1 : index
    %c0_11 = arith.constant 0 : index
    %c0_12 = arith.constant 0 : index
    %14 = vector.load %arg5[%c1, %c0_11, %c0_12] : memref<5x1x128xf32, #tpu.memory_space<vmem>>, vector<1x1x128xf32>
    %15 = vector.shape_cast %14 : vector<1x1x128xf32> to vector<1x128xf32>
    %16 = vector.broadcast %15 : vector<1x128xf32> to vector<32x128xf32>
    %17 = arith.addf %13, %16 : vector<32x128xf32>
    %cst_13 = arith.constant 0.000000e+00 : f32
    %18 = vector.broadcast %cst_13 : f32 to vector<32x128xf32>
    %19 = arith.maximumf %17, %18 : vector<32x128xf32>
    %20 = arith.truncf %19 : vector<32x128xf32> to vector<32x128xbf16>
    %c1_14 = arith.constant 1 : index
    %c0_15 = arith.constant 0 : index
    %c0_16 = arith.constant 0 : index
    %21 = vector.load %arg3[%c1_14, %c0_15, %c0_16] : memref<4x128x128xbf16, #tpu.memory_space<vmem>>, vector<1x128x128xbf16>
    %22 = vector.shape_cast %21 : vector<1x128x128xbf16> to vector<128x128xbf16>
    %cst_17 = arith.constant dense<0.000000e+00> : vector<32x128xf32>
    %23 = tpu.matmul %20, %22, %cst_17 {dimension_numbers = #tpu.dot_dimension_numbers<[1], [0], [0], [1], [0, 0, 1, 1], [], []>} : vector<32x128xbf16>, vector<128x128xbf16>, vector<32x128xf32> -> vector<32x128xf32>
    %c2 = arith.constant 2 : index
    %c0_18 = arith.constant 0 : index
    %c0_19 = arith.constant 0 : index
    %24 = vector.load %arg5[%c2, %c0_18, %c0_19] : memref<5x1x128xf32, #tpu.memory_space<vmem>>, vector<1x1x128xf32>
    %25 = vector.shape_cast %24 : vector<1x1x128xf32> to vector<1x128xf32>
    %26 = vector.broadcast %25 : vector<1x128xf32> to vector<32x128xf32>
    %27 = arith.addf %23, %26 : vector<32x128xf32>
    %28 = arith.truncf %27 : vector<32x128xf32> to vector<32x128xbf16>
    %c2_20 = arith.constant 2 : index
    %c0_21 = arith.constant 0 : index
    %c0_22 = arith.constant 0 : index
    %29 = vector.load %arg3[%c2_20, %c0_21, %c0_22] : memref<4x128x128xbf16, #tpu.memory_space<vmem>>, vector<1x128x128xbf16>
    %30 = vector.shape_cast %29 : vector<1x128x128xbf16> to vector<128x128xbf16>
    %cst_23 = arith.constant dense<0.000000e+00> : vector<32x128xf32>
    %31 = tpu.matmul %28, %30, %cst_23 {dimension_numbers = #tpu.dot_dimension_numbers<[1], [0], [0], [1], [0, 0, 1, 1], [], []>} : vector<32x128xbf16>, vector<128x128xbf16>, vector<32x128xf32> -> vector<32x128xf32>
    %c3 = arith.constant 3 : index
    %c0_24 = arith.constant 0 : index
    %c0_25 = arith.constant 0 : index
    %32 = vector.load %arg5[%c3, %c0_24, %c0_25] : memref<5x1x128xf32, #tpu.memory_space<vmem>>, vector<1x1x128xf32>
    %33 = vector.shape_cast %32 : vector<1x1x128xf32> to vector<1x128xf32>
    %34 = vector.broadcast %33 : vector<1x128xf32> to vector<32x128xf32>
    %35 = arith.addf %31, %34 : vector<32x128xf32>
    %cst_26 = arith.constant 0.000000e+00 : f32
    %36 = vector.broadcast %cst_26 : f32 to vector<32x128xf32>
    %37 = arith.maximumf %35, %36 : vector<32x128xf32>
    %38 = arith.truncf %37 : vector<32x128xf32> to vector<32x128xbf16>
    %c3_27 = arith.constant 3 : index
    %c0_28 = arith.constant 0 : index
    %c0_29 = arith.constant 0 : index
    %39 = vector.load %arg3[%c3_27, %c0_28, %c0_29] : memref<4x128x128xbf16, #tpu.memory_space<vmem>>, vector<1x128x128xbf16>
    %40 = vector.shape_cast %39 : vector<1x128x128xbf16> to vector<128x128xbf16>
    %cst_30 = arith.constant dense<0.000000e+00> : vector<32x128xf32>
    %41 = tpu.matmul %38, %40, %cst_30 {dimension_numbers = #tpu.dot_dimension_numbers<[1], [0], [0], [1], [0, 0, 1, 1], [], []>} : vector<32x128xbf16>, vector<128x128xbf16>, vector<32x128xf32> -> vector<32x128xf32>
    %c4 = arith.constant 4 : index
    %c0_31 = arith.constant 0 : index
    %c0_32 = arith.constant 0 : index
    %42 = vector.load %arg5[%c4, %c0_31, %c0_32] : memref<5x1x128xf32, #tpu.memory_space<vmem>>, vector<1x1x128xf32>
    %43 = vector.shape_cast %42 : vector<1x1x128xf32> to vector<1x128xf32>
    %44 = vector.broadcast %43 : vector<1x128xf32> to vector<32x128xf32>
    %45 = arith.addf %41, %44 : vector<32x128xf32>
    %cst_33 = arith.constant 0.000000e+00 : f32
    %46 = vector.broadcast %cst_33 : f32 to vector<32x128xf32>
    %47 = arith.maximumf %45, %46 : vector<32x128xf32>
    %48 = arith.truncf %47 : vector<32x128xf32> to vector<32x128xbf16>
    %c0_34 = arith.constant 0 : index
    %c0_35 = arith.constant 0 : index
    %49 = vector.load %arg4[%c0_34, %c0_35] : memref<128x784xbf16, #tpu.memory_space<vmem>>, vector<128x784xbf16>
    %cst_36 = arith.constant dense<0.000000e+00> : vector<32x784xf32>
    %50 = tpu.matmul %48, %49, %cst_36 {dimension_numbers = #tpu.dot_dimension_numbers<[1], [0], [0], [1], [0, 0, 1, 1], [], []>} : vector<32x128xbf16>, vector<128x784xbf16>, vector<32x784xf32> -> vector<32x784xf32>
    %c0_37 = arith.constant 0 : index
    %c0_38 = arith.constant 0 : index
    %51 = vector.load %arg6[%c0_37, %c0_38] : memref<1x784xf32, #tpu.memory_space<vmem>>, vector<1x784xf32>
    %52 = vector.broadcast %51 : vector<1x784xf32> to vector<32x784xf32>
    %53 = arith.addf %50, %52 : vector<32x784xf32>
    %cst_39 = arith.constant 5.000000e-01 : f32
    %54 = vector.broadcast %cst_39 : f32 to vector<32x784xf32>
    %55 = arith.mulf %54, %53 : vector<32x784xf32>
    %56 = math.tanh %55 : vector<32x784xf32>
    %cst_40 = arith.constant 1.000000e+00 : f32
    %57 = vector.broadcast %cst_40 : f32 to vector<32x784xf32>
    %58 = arith.addf %56, %57 : vector<32x784xf32>
    %cst_41 = arith.constant 5.000000e-01 : f32
    %59 = vector.broadcast %cst_41 : f32 to vector<32x784xf32>
    %60 = arith.mulf %59, %58 : vector<32x784xf32>
    %c0_42 = arith.constant 0 : index
    %c0_43 = arith.constant 0 : index
    %61 = vector.load %arg7[%c0_42, %c0_43] : memref<32x784xf32, #tpu.memory_space<vmem>>, vector<32x784xf32>
    tpu.vector_store %arg7[%c0_42, %c0_43], %60 {strides = array<i32>} : memref<32x784xf32, #tpu.memory_space<vmem>>, vector<32x784xf32>,
    return
  }
  func.func @transform_0(%arg0: i32) -> (i32, i32) {
    %c0_i32 = arith.constant 0 : i32
    %c0_i32_0 = arith.constant 0 : i32
    return %arg0, %c0_i32 : i32, i32
  }
  func.func @transform_1(%arg0: i32) -> (i32, i32) {
    %c0_i32 = arith.constant 0 : i32
    %c0_i32_0 = arith.constant 0 : i32
    %c0_i32_1 = arith.constant 0 : i32
    return %c0_i32, %c0_i32_0 : i32, i32
  }
  func.func @transform_2(%arg0: i32) -> (i32, i32, i32) {
    %c0_i32 = arith.constant 0 : i32
    %c0_i32_0 = arith.constant 0 : i32
    %c0_i32_1 = arith.constant 0 : i32
    %c0_i32_2 = arith.constant 0 : i32
    return %c0_i32, %c0_i32_0, %c0_i32_1 : i32, i32, i32
  }
  func.func @transform_3(%arg0: i32) -> (i32, i32) {
    %c0_i32 = arith.constant 0 : i32
    %c0_i32_0 = arith.constant 0 : i32
    %c0_i32_1 = arith.constant 0 : i32
    return %c0_i32, %c0_i32_0 : i32, i32
  }
  func.func @transform_4(%arg0: i32) -> (i32, i32, i32) {
    %c0_i32 = arith.constant 0 : i32
    %c0_i32_0 = arith.constant 0 : i32
    %c0_i32_1 = arith.constant 0 : i32
    %c0_i32_2 = arith.constant 0 : i32
    return %c0_i32, %c0_i32_0, %c0_i32_1 : i32, i32, i32
  }
  func.func @transform_5(%arg0: i32) -> (i32, i32) {
    %c0_i32 = arith.constant 0 : i32
    %c0_i32_0 = arith.constant 0 : i32
    %c0_i32_1 = arith.constant 0 : i32
    return %c0_i32, %c0_i32_0 : i32, i32
  }
  func.func @transform_6(%arg0: i32) -> (i32, i32) {
    %c0_i32 = arith.constant 0 : i32
    %c0_i32_0 = arith.constant 0 : i32
    return %arg0, %c0_i32 : i32, i32
  }
}

</mosaic_0001>

<bundles_post_ra>
// kernel: autoencoder_forward.1
= control target key start
LH: loop header
LB: loop body
LE: loop exit
PB: predicated region body
PF: predicated region fallthrough
CT: control target
= control target key end

     0   :  { %11 = vsyncpa [#allocation3], 0  ;;  %s3194_s0 = inlined_call_operand.hbm [shape: f32[32,784], index: 0, kind: input, shape index: {}]   ;;  %s3195_s1 = inlined_call_operand.vmem [shape: bf16[784,128], index: 1, kind: input, shape index: {}]   ;;  %s3196_s2 = inlined_call_operand.vmem [shape: bf16[4,128,128], index: 2, kind: input, shape index: {}]   ;;  %s3197_s3 = inlined_call_operand.vmem [shape: bf16[128,784], index: 3, kind: input, shape index: {}]   ;;  %s3198_s4 = inlined_call_operand.vmem [shape: f32[5,1,128], index: 4, kind: input, shape index: {}]   ;;  %s3199_s5 = inlined_call_operand.vmem [shape: f32[1,784], index: 5, kind: input, shape index: {}]   ;;  %s3200_s6 = inlined_call_operand.hbm [shape: f32[32,784], index: 6, kind: output, shape index: {}]  }
   0x1   :  { %12 = vsyncpa [#allocation4], 0  ;;  %s2659_s21 = smov [#allocation2]   ;;  %s2611_s25 = scalar_lea.hbm %s3194_s0, 3584 }
   0x2   :  { %s18_s22 = sshll.u32 %s2659_s21, 4  ;;  %p2612_p0 = scmp.ne.s32.totalorder %s3194_s0, %s2611_s25  ;;  %s19_s22 = int_to_ptr.vmem [resolvable:$true] %s18_s22 }
   0x3   :  { %p2615_p1 = scmp.lt.u32.totalorder %s2611_s25, %s3194_s0 }
   0x5   :  { %p2617_p2 = pnand %p2615_p1, %p2612_p0 }
   0x7   :  { %2620 = shalt.err (!%p2617_p2)
}
   0x8   :  { %s2621_s30 = scalar_lea.vmem %s19_s22, 3584  ;;  %p2626_p4 = scmp.lt.s32.totalorder %s19_s22, %s19_s22 }
   0x9   :  { %p2622_p3 = scmp.ne.s32.totalorder %s19_s22, %s2621_s30  ;;  %p2627_p5 = scmp.lt.s32.totalorder %s2621_s30, %s2621_s30 }
   0xb   :  { %p2628_p6 = por %p2627_p5, %p2626_p4 }
   0xd   :  { %p2629_p7 = pnand %p2628_p6, %p2622_p3 }
   0xf   :  { %2632 = shalt.err (!%p2629_p7)
}
  0x10   :  { %s2660_s7 = smov 896   ;;  %s2661_s8 = smov 56  }
  0x11   :  { %24 = dma.hbm_to_vmem [thread:$0]  %s3194_s0, 3584, %s19_s22, [#allocation3], %s2660_s7, %s2660_s7, %s2661_s8  }
  0x12   :  { %2655 = dma.done.wait [#allocation3], 3584  }
  0x13   :  { %2656 = vsyncadd [#allocation3], 4294963712  ;;  %v2394_v0 = vld [vmem:[%s3195_s1 + $0x40] sm:$0xff]   ;;  %v2398_v4 = vld [vmem:[%s3195_s1 + $0x48] sm:$0xff]   ;;  %vm480_vm0 = vcmask 130048  }
  0x14   :  { %v2395_v1 = vld [vmem:[%s3195_s1] sm:$0xff]   ;;  %2146 = vmatprep.subr.bf16.mxu0 %v2394_v0  ;;  %v2399_v5 = vld [vmem:[%s3195_s1 + $0x8] sm:$0xff]   ;;  %v2402_v8 = vld [vmem:[%s3195_s1 + $0x50] sm:$0xff]  }
  0x15   :  { %v2396_v2 = vld [vmem:[%s3195_s1 + $0xc0] sm:$0xff]   ;;  %2147 = vmatpush3.bf16.msra.mxu0 %v2395_v1  ;;  %v2400_v6 = vld [vmem:[%s3195_s1 + $0xc8] sm:$0xff]   ;;  %v2403_v9 = vld [vmem:[%s3195_s1 + $0x10] sm:$0xff]  }
  0x16   :  { %v2397_v3 = vld [vmem:[%s3195_s1 + $0x80] sm:$0xff]   ;;  %2174 = vmatprep.subr.bf16.mxu1 %v2396_v2  ;;  %2148 = vmatprep.subr.bf16.mxu0 %v2398_v4  ;;  %v2401_v7 = vld [vmem:[%s3195_s1 + $0x88] sm:$0xff]   ;;  %v2404_v10 = vld [vmem:[%s3195_s1 + $0xd0] sm:$0xff]  }
  0x17   :  { %2175 = vmatpush3.bf16.msra.mxu1 %v2397_v3  ;;  %v2405_v11 = vld [vmem:[%s3195_s1 + $0x90] sm:$0xff]   ;;  %v2406_v12 = vld [vmem:[%s3195_s1 + $0x58] sm:$0xff]   ;;  %v2410_v16 = vld [vmem:[%s3195_s1 + $0x60] sm:$0xff]  }
  0x18   :  { %2176 = vmatprep.subr.bf16.mxu1 %v2400_v6  ;;  %v2407_v13 = vld [vmem:[%s3195_s1 + $0x18] sm:$0xff]   ;;  %v2411_v17 = vld [vmem:[%s3195_s1 + $0x20] sm:$0xff]   ;;  %v2414_v20 = vld [vmem:[%s3195_s1 + $0x68] sm:$0xff]  }
  0x19   :  { %2149 = vmatpush3.bf16.msra.mxu0 %v2399_v5  ;;  %v2408_v14 = vld [vmem:[%s3195_s1 + $0xd8] sm:$0xff]   ;;  %v2412_v18 = vld [vmem:[%s3195_s1 + $0xe0] sm:$0xff]   ;;  %v2415_v21 = vld [vmem:[%s3195_s1 + $0x28] sm:$0xff]  }
  0x1a   :  { %2150 = vmatprep.subr.bf16.mxu0 %v2402_v8  ;;  %v2409_v15 = vld [vmem:[%s3195_s1 + $0x98] sm:$0xff]   ;;  %v2413_v19 = vld [vmem:[%s3195_s1 + $0xa0] sm:$0xff]   ;;  %v2416_v22 = vld [vmem:[%s3195_s1 + $0xe8] sm:$0xff]  }
  0x1b   :  { %2177 = vmatpush3.bf16.msra.mxu1 %v2401_v7  ;;  %v2417_v23 = vld [vmem:[%s3195_s1 + $0xa8] sm:$0xff]   ;;  %v2418_v24 = vld [vmem:[%s3195_s1 + $0x70] sm:$0xff]   ;;  %v2422_v28 = vld [vmem:[%s3195_s1 + $0x78] sm:$0xff]  }
  0x1c   :  { %2178 = vmatprep.subr.bf16.mxu1 %v2404_v10  ;;  %v2419_v25 = vld [vmem:[%s3195_s1 + $0x30] sm:$0xff]   ;;  %v2423_v29 = vld [vmem:[%s3195_s1 + $0x38] sm:$0xff]   ;;  %v40_v31 = vld [vmem:[#allocation2 + $0x8] sm:$0xff] }
  0x1d   :  { %2151 = vmatpush3.bf16.msra.mxu0 %v2403_v9  ;;  %v2420_v26 = vld [vmem:[%s3195_s1 + $0xf0] sm:$0xff]   ;;  %v2424_v30 = vld [vmem:[%s3195_s1 + $0xf8] sm:$0xff]   ;;  %v47_v32 = vld [vmem:[#allocation2 + $0x40] sm:$0xff] }
  0x1e   :  { %2152 = vmatprep.subr.bf16.mxu0 %v2406_v12  ;;  %v2421_v27 = vld [vmem:[%s3195_s1 + $0xb0] sm:$0xff]   ;;  %v68_v33 = vpack.c.bf16 %v47_v32, %v40_v31  ;;  %v2425_v34 = vld [vmem:[%s3195_s1 + $0xb8] sm:$0xff]   ;;  %v39_v35 = vld [vmem:[#allocation2] sm:$0xff] }
  0x1f   :  { %2179 = vmatpush3.bf16.msra.mxu1 %v2405_v11  ;;  %v46_v36 = vld [vmem:[#allocation2 + $0x38] sm:$0xff]  ;;  %v2426_v38 = vld [vmem:[%s3195_s1 + $0x140] sm:$0xff]   ;;  %v49_v40 = vld [vmem:[#allocation2 + $0x50] sm:$0xff] }
  0x20   :  { %2180 = vmatprep.subr.bf16.mxu1 %v2408_v14  ;;  %519 = vmatprep.mubr.bf16.mxu0 %v68_v33  ;;  %v67_v37 = vpack.c.bf16 %v46_v36, %v39_v35  ;;  %v42_v39 = vld [vmem:[#allocation2 + $0x18] sm:$0xff]  ;;  %v2427_v42 = vld [vmem:[%s3195_s1 + $0x100] sm:$0xff]   ;;  %v41_v43 = vld [vmem:[#allocation2 + $0x10] sm:$0xff] }
  0x21   :  { %2153 = vmatpush3.bf16.msra.mxu0 %v2407_v13  ;;  %v70_v41 = vpack.c.bf16 %v49_v40, %v42_v39  ;;  %v48_v44 = vld [vmem:[#allocation2 + $0x48] sm:$0xff]  ;;  %v2430_v48 = vld [vmem:[%s3195_s1 + $0x150] sm:$0xff]   ;;  %v2432_v50 = vld [vmem:[%s3195_s1 + $0x158] sm:$0xff]  }
  0x22   :  { %2154 = vmatprep.subr.bf16.mxu0 %v2410_v16  ;;  %v69_v45 = vpack.c.bf16 %v48_v44, %v41_v43  ;;  %v2428_v46 = vld [vmem:[%s3195_s1 + $0x148] sm:$0xff]   ;;  %v2431_v49 = vld [vmem:[%s3195_s1 + $0x110] sm:$0xff]   ;;  %v2433_v51 = vld [vmem:[%s3195_s1 + $0x118] sm:$0xff]  }
  0x23   :  { %2181 = vmatpush3.bf16.msra.mxu1 %v2409_v15  ;;  %568 = vmatprep.mubr.bf16.mxu1 %v70_v41  ;;  %v2429_v47 = vld [vmem:[%s3195_s1 + $0x108] sm:$0xff]   ;;  %v54_v52 = vld [vmem:[#allocation2 + $0x78] sm:$0xff]  ;;  %v61_v53 = vld [vmem:[#allocation2 + $0xb0] sm:$0xff] }
  0x24   :  { %2182 = vmatprep.subr.bf16.mxu1 %v2412_v18  ;;  %v2434_v54 = vld [vmem:[%s3195_s1 + $0x160] sm:$0xff]   ;;  %v75_v55 = vpack.c.bf16 %v61_v53, %v54_v52  ;;  %v53_v56 = vld [vmem:[#allocation2 + $0x70] sm:$0xff]  ;;  %v60_v57 = vld [vmem:[#allocation2 + $0xa8] sm:$0xff] }
  0x25   :  { %2155 = vmatpush3.bf16.msra.mxu0 %v2411_v17  ;;  %v2435_v58 = vld [vmem:[%s3195_s1 + $0x120] sm:$0xff]   ;;  %v74_v59 = vpack.c.bf16 %v60_v57, %v53_v56  ;;  %v56_v60 = vld [vmem:[#allocation2 + $0x88] sm:$0xff]  ;;  %v62_v0 = vld [vmem:[#allocation2 + $0xb8] sm:$0xff] }
  0x26   :  { %2156 = vmatprep.subr.bf16.mxu0 %v2414_v20  ;;  %v63_v61 = vld [vmem:[#allocation2 + $0xc0] sm:$0xff]  ;;  %v2436_v1 = vld [vmem:[%s3195_s1 + $0x168] sm:$0xff]   ;;  %v2438_v5 = vld [vmem:[%s3195_s1 + $0x170] sm:$0xff]  }
  0x27   :  { %2183 = vmatpush3.bf16.msra.mxu1 %v2413_v19  ;;  %v55_v62 = vld [vmem:[#allocation2 + $0x80] sm:$0xff]  ;;  %v77_v63 = vpack.c.bf16 %v63_v61, %v56_v60  ;;  %v2437_v4 = vld [vmem:[%s3195_s1 + $0x128] sm:$0xff]   ;;  %v45_v9 = vld [vmem:[#allocation2 + $0x30] sm:$0xff] }
  0x28   :  { %2184 = vmatprep.subr.bf16.mxu1 %v2416_v22  ;;  %v76_v2 = vpack.c.bf16 %v62_v0, %v55_v62  ;;  %v2440_v3 = vld [vmem:[%s3195_s1 + $0x180] sm:$0xff]   ;;  %v44_v6 = vld [vmem:[#allocation2 + $0x28] sm:$0xff]  ;;  %v66_v12 = vld [vmem:[#allocation2 + $0xd8] sm:$0xff] }
  0x29   :  { %2157 = vmatpush3.bf16.msra.mxu0 %v2415_v21  ;;  %v51_v7 = vld [vmem:[#allocation2 + $0x60] sm:$0xff]  ;;  %v52_v10 = vld [vmem:[#allocation2 + $0x68] sm:$0xff]  ;;  %v2439_v13 = vld [vmem:[%s3195_s1 + $0x130] sm:$0xff]  }
  0x2a   :  { %2158 = vmatprep.subr.bf16.mxu0 %v2418_v24  ;;  %v72_v8 = vpack.c.bf16 %v51_v7, %v44_v6  ;;  %v59_v11 = vld [vmem:[#allocation2 + $0xa0] sm:$0xff]  ;;  %v73_v14 = vpack.c.bf16 %v52_v10, %v45_v9  ;;  %v2441_v16 = vld [vmem:[%s3195_s1 + $0x178] sm:$0xff]   ;;  %v65_v21 = vld [vmem:[#allocation2 + $0xd0] sm:$0xff] }
  0x2b   :  { %2185 = vmatpush3.bf16.msra.mxu1 %v2417_v23  ;;  %v80_v15 = vpack.c.bf16 %v66_v12, %v59_v11  ;;  %v2442_v17 = vld [vmem:[%s3195_s1 + $0x138] sm:$0xff]   ;;  %v43_v18 = vld [vmem:[#allocation2 + $0x20] sm:$0xff]  ;;  %v57_v24 = vld [vmem:[#allocation2 + $0x90] sm:$0xff] }
  0x2c   :  { %2186 = vmatprep.subr.bf16.mxu1 %v2420_v26  ;;  %v50_v19 = vld [vmem:[#allocation2 + $0x58] sm:$0xff]  ;;  %v2447_v31 = vld [vmem:[%s3196_s2 + $0x20] sm:$0xff]   ;;  %v2448_v32 = vld [vmem:[%s3196_s2 + $0x28] sm:$0xff]  }
  0x2d   :  { %2159 = vmatpush3.bf16.msra.mxu0 %v2419_v25  ;;  %v58_v20 = vld [vmem:[#allocation2 + $0x98] sm:$0xff]  ;;  %v71_v22 = vpack.c.bf16 %v50_v19, %v43_v18  ;;  %v64_v25 = vld [vmem:[#allocation2 + $0xc8] sm:$0xff]  ;;  %v2449_v33 = vld [vmem:[%s3196_s2 + $0x30] sm:$0xff]  }
  0x2e   :  { %2160 = vmatprep.subr.bf16.mxu0 %v2422_v28  ;;  %v79_v23 = vpack.c.bf16 %v65_v21, %v58_v20  ;;  %v78_v26 = vpack.c.bf16 %v64_v25, %v57_v24  ;;  %v2444_v28 = vld [vmem:[%s3196_s2 + $0x8] sm:$0xff]   ;;  %v2451_v35 = vld [vmem:[%s3196_s2 + $0x40] sm:$0xff]  }
  0x2f   :  { %2187 = vmatpush3.bf16.msra.mxu1 %v2421_v27  ;;  %v2443_v27 = vld [vmem:[%s3196_s2] sm:$0xff]   ;;  %v2452_v36 = vld [vmem:[%s3196_s2 + $0x48] sm:$0xff]  }
  0x30   :  { %2188 = vmatprep.subr.bf16.mxu1 %v2424_v30  ;;  %v2446_v30 = vld [vmem:[%s3196_s2 + $0x18] sm:$0xff]   ;;  %v2455_v39 = vld [vmem:[%s3196_s2 + $0x60] sm:$0xff]   ;;  %v2456_v40 = vld [vmem:[%s3196_s2 + $0x68] sm:$0xff]  }
  0x31   :  { %2161 = vmatpush3.bf16.msra.mxu0 %v2423_v29  ;;  %v2445_v29 = vld [vmem:[%s3196_s2 + $0x10] sm:$0xff]  }
  0x32   :  { %2202 = vmatprep.subr.bf16.mxu0 %v2426_v38  ;;  %v2454_v38 = vld [vmem:[%s3196_s2 + $0x58] sm:$0xff]  }
  0x33   :  { %2189 = vmatpush3.bf16.msra.mxu1 %v2425_v34  ;;  %v2450_v34 = vld [vmem:[%s3196_s2 + $0x38] sm:$0xff]  }
  0x34   :  { %520 = vmatmul.mubr.bf16.vlgmr.msra.gmra.mrb[0].mxu0 %v67_v37  ;;  %2283 = vmatprep.subr.bf16.mxu1 %v2440_v3  ;;  %v2453_v37 = vld [vmem:[%s3196_s2 + $0x50] sm:$0xff]  }
  0x35   :  { %2203 = vmatpush3.bf16.msra.mxu0 %v2427_v42  ;;  %527 = vmatprep.mubr.bf16.mxu0 %v75_v55  ;;  %v1950_v42 = vld [vmem:[%s3198_s4] ss:$0 sm:$0xff] }
  0x36   :  { %569 = vmatmul.mubr.bf16.vlgmr.msra.gmra.mrb[0].mxu1 %v69_v45  ;;  %2204 = vmatprep.subr.bf16.mxu0 %v2428_v46 }
  0x37   :  { %576 = vmatprep.mubr.bf16.mxu1 %v77_v63  ;;  %2284 = vmatpush3.bf16.msra.mxu1 %v2440_v3 }
  0x38   :  { %2289 = vmatprep.subr.bf16.mxu1 %v2443_v27 }
  0x39   :  { %2205 = vmatpush3.bf16.msra.mxu0 %v2429_v47 }
  0x3a   :  { %2206 = vmatprep.subr.bf16.mxu0 %v2430_v48 }
  0x3c   :  { %528 = vmatmul.mubr.bf16.gmra.mrb[4].mxu0 %v74_v59 }
  0x3d   :  { %2207 = vmatpush3.bf16.msra.mxu0 %v2431_v49  ;;  %617 = vmatprep.mubr.bf16.mxu0 %v72_v8 }
  0x3e   :  { %2208 = vmatprep.subr.bf16.mxu0 %v2432_v50  ;;  %577 = vmatmul.mubr.bf16.gmra.mrb[4].mxu1 %v76_v2 }
  0x3f   :  { %2285 = vmatprep.mubr.msk.bf16.mxu1 %vm480_vm0, %v73_v14 }
  0x41   :  { %2209 = vmatpush3.bf16.msra.mxu0 %v2433_v51 }
  0x42   :  { %2210 = vmatprep.subr.bf16.mxu0 %v2434_v54 }
  0x45   :  { %2211 = vmatpush3.bf16.msra.mxu0 %v2435_v58 }
  0x46   :  { %2212 = vmatprep.subr.bf16.mxu0 %v2436_v1  ;;  %2286 = vmatmul.mubr.msk.bf16.vlgmr.msra.gmra.mrb[8].mxu1 %vm480_vm0, %v80_v15 }
  0x47   :  { %2290 = vmatpush3.bf16.msra.mxu1 %v2443_v27 }
  0x48   :  { %2291 = vmatprep.subr.bf16.mxu1 %v2444_v28 }
  0x49   :  { %2213 = vmatpush3.bf16.msra.mxu0 %v2437_v4 }
  0x4a   :  { %2214 = vmatprep.subr.bf16.mxu0 %v2438_v5 }
  0x4b   :  { %2292 = vmatpush3.bf16.msra.mxu1 %v2444_v28 }
  0x4c   :  { %2293 = vmatprep.subr.bf16.mxu1 %v2445_v29 }
  0x4d   :  { %2215 = vmatpush3.bf16.msra.mxu0 %v2439_v13 }
  0x4e   :  { %2216 = vmatprep.subr.bf16.mxu0 %v2441_v16 }
  0x4f   :  { %2294 = vmatpush3.bf16.msra.mxu1 %v2445_v29 }
  0x50   :  { %2295 = vmatprep.subr.bf16.mxu1 %v2446_v30 }
  0x51   :  { %2217 = vmatpush3.bf16.msra.mxu0 %v2442_v17 }
  0x52   :  { %2309 = vmatprep.subr.bf16.mxu0 %v2451_v35 }
  0x53   :  { %2296 = vmatpush3.bf16.msra.mxu1 %v2446_v30 }
  0x54   :  { %618 = vmatmul.mubr.bf16.vlgmr.msra.gmra.mrb[8].mxu0 %v71_v22  ;;  %2297 = vmatprep.subr.bf16.mxu1 %v2447_v31 }
  0x55   :  { %625 = vmatprep.mubr.bf16.mxu0 %v79_v23  ;;  %2310 = vmatpush3.bf16.msra.mxu0 %v2451_v35 }
  0x56   :  { %2311 = vmatprep.subr.bf16.mxu0 %v2452_v36 }
  0x57   :  { %2298 = vmatpush3.bf16.msra.mxu1 %v2447_v31 }
  0x58   :  { %2299 = vmatprep.subr.bf16.mxu1 %v2448_v32 }
  0x59   :  { %2312 = vmatpush3.bf16.msra.mxu0 %v2452_v36 }
  0x5a   :  { %2313 = vmatprep.subr.bf16.mxu0 %v2453_v37 }
  0x5b   :  { %2300 = vmatpush3.bf16.msra.mxu1 %v2448_v32 }
  0x5c   :  { %626 = vmatmul.mubr.bf16.gmra.mrb[12].mxu0 %v78_v26  ;;  %2301 = vmatprep.subr.bf16.mxu1 %v2449_v33 }
  0x5d   :  { %2314 = vmatpush3.bf16.msra.mxu0 %v2453_v37 }
  0x5e   :  { %2315 = vmatprep.subr.bf16.mxu0 %v2454_v38 }
  0x5f   :  { %2302 = vmatpush3.bf16.msra.mxu1 %v2449_v33 }
  0x60   :  { %2303 = vmatprep.subr.bf16.mxu1 %v2450_v34 }
  0x61   :  { %2316 = vmatpush3.bf16.msra.mxu0 %v2454_v38 }
  0x62   :  { %2317 = vmatprep.subr.bf16.mxu0 %v2455_v39 }
  0x63   :  { %2304 = vmatpush3.bf16.msra.mxu1 %v2450_v34 }
  0x65   :  { %2318 = vmatpush3.bf16.msra.mxu0 %v2455_v39 }
  0x66   :  { %2319 = vmatprep.subr.bf16.mxu0 %v2456_v40 }
  0x69   :  { %2320 = vmatpush3.bf16.msra.mxu0 %v2456_v40  ;;  %v2457_v40 = vld [vmem:[%s3196_s2 + $0x70] sm:$0xff]  }
  0x6a   :  { %2321 = vmatprep.subr.bf16.mxu0 %v2457_v40 }
  0x6d   :  { %2322 = vmatpush3.bf16.msra.mxu0 %v2457_v40 }
 0x107   :  { %v2162_v41 = vpop.f32.mrb[0].mxu0 }
 0x108   :  { %v2163_v43 = vpop.f32.mrb[1].mxu0 }
 0x109   :  { %v2164_v44 = vadd.f32 %v2163_v43, %v2162_v41  ;;  %v2165_v45 = vpop.f32.mrb[2].mxu0  ;;  %v2190_v46 = vpop.f32.mrb[0].mxu1  ;;  %v2458_v41 = vld [vmem:[%s3196_s2 + $0x78] sm:$0xff]   ;;  %v2460_v43 = vld [vmem:[%s3196_s2 + $0x88] sm:$0xff]  }
 0x10a   :  { %v2166_v47 = vpop.f32.mrb[3].mxu0  ;;  %v2191_v50 = vpop.f32.mrb[1].mxu1  ;;  %2323 = vmatprep.subr.bf16.mxu0 %v2458_v41 }
 0x10b   :  { %v522_v48 = vadd.f32 %v2164_v44, %v1950_v42  ;;  %v2167_v49 = vadd.f32 %v2166_v47, %v2165_v45  ;;  %v2192_v51 = vadd.f32 %v2191_v50, %v2190_v46  ;;  %v2193_v52 = vpop.f32.mrb[2].mxu1  ;;  %2324 = vmatpush3.bf16.msra.mxu0 %v2458_v41  ;;  %v2461_v44 = vld [vmem:[%s3196_s2 + $0x90] sm:$0xff]   ;;  %v2462_v45 = vld [vmem:[%s3196_s2 + $0x98] sm:$0xff]   ;;  %v2463_v46 = vld [vmem:[%s3196_s2 + $0xa0] sm:$0xff]  }
 0x10c   :  { %v2194_v54 = vpop.f32.mrb[3].mxu1  ;;  %v2464_v47 = vld [vmem:[%s3196_s2 + $0xa8] sm:$0xff]  }
 0x10d   :  { %v525_v53 = vadd.f32 %v2167_v49, %v1950_v42  ;;  %v571_v55 = vadd.f32 %v2192_v51, %v522_v48  ;;  %v2195_v56 = vadd.f32 %v2194_v54, %v2193_v52  ;;  %v2003_v48 = vld [vmem:[%s3198_s4 + $0x1] ss:$0 sm:$0xff] }
 0x10f   :  { %v574_v57 = vadd.f32 %v2195_v56, %v525_v53  ;;  %v2168_v58 = vpop.f32.mrb[4].mxu0 }
 0x110   :  { %v2169_v59 = vpop.f32.mrb[5].mxu0 }
 0x111   :  { %v2170_v60 = vadd.f32 %v2169_v59, %v2168_v58  ;;  %v2171_v61 = vpop.f32.mrb[6].mxu0  ;;  %v2196_v62 = vpop.f32.mrb[4].mxu1 }
 0x112   :  { %v2172_v63 = vpop.f32.mrb[7].mxu0  ;;  %v2197_v0 = vpop.f32.mrb[5].mxu1 }
 0x113   :  { %v530_v1 = vadd.f32 %v2170_v60, %v1950_v42  ;;  %v2173_v2 = vadd.f32 %v2172_v63, %v2171_v61  ;;  %v2198_v3 = vadd.f32 %v2197_v0, %v2196_v62  ;;  %v2199_v4 = vpop.f32.mrb[6].mxu1  ;;  %v2465_v63 = vld [vmem:[%s3196_s2 + $0xb0] sm:$0xff]   ;;  %v2466_v0 = vld [vmem:[%s3196_s2 + $0xb8] sm:$0xff]  }
 0x114   :  { %v2200_v5 = vpop.f32.mrb[7].mxu1 }
 0x115   :  { %v533_v6 = vadd.f32 %v2173_v2, %v1950_v42  ;;  %v579_v7 = vadd.f32 %v2198_v3, %v530_v1  ;;  %v2201_v8 = vadd.f32 %v2200_v5, %v2199_v4  ;;  %v2459_v42 = vld [vmem:[%s3196_s2 + $0x80] sm:$0xff]   ;;  %v2468_v2 = vld [vmem:[%s3196_s2 + $0xc8] sm:$0xff]   ;;  %v2469_v3 = vld [vmem:[%s3196_s2 + $0xd0] sm:$0xff]  }
 0x116   :  { %2329 = vmatprep.subr.bf16.mxu1 %v2459_v42  ;;  %v2467_v1 = vld [vmem:[%s3196_s2 + $0xc0] sm:$0xff]   ;;  %v2470_v4 = vld [vmem:[%s3196_s2 + $0xd8] sm:$0xff]  }
 0x117   :  { %v582_v9 = vadd.f32 %v2201_v8, %v533_v6  ;;  %2349 = vmatprep.subr.bf16.mxu0 %v2467_v1  ;;  %v2471_v5 = vld [vmem:[%s3196_s2 + $0xe0] sm:$0xff]   ;;  %v2472_v6 = vld [vmem:[%s3196_s2 + $0xe8] sm:$0xff]  }
 0x118   :  { %v2029_v8 = vld [vmem:[%s3198_s4 + $0x2] ss:$0 sm:$0xff] }
 0x119   :  { %v2287_v10 = vpop.f32.mrb[8].mxu1 }
 0x11a   :  { %v668_v11 = vpop.f32.mrb[9].mxu1 }
 0x11b   :  { %v2288_v12 = vpop.f32.mrb[10].mxu1 }
 0x11c   :  { %v671_v13 = vpop.f32.mrb[11].mxu1 }
 0x127   :  { %v2218_v14 = vpop.f32.mrb[8].mxu0 }
 0x128   :  { %v2219_v15 = vpop.f32.mrb[9].mxu0 }
 0x129   :  { %v2220_v16 = vadd.f32 %v2219_v15, %v2218_v14  ;;  %v2221_v17 = vpop.f32.mrb[10].mxu0 }
 0x12a   :  { %v2222_v18 = vpop.f32.mrb[11].mxu0 }
 0x12b   :  { %v2223_v19 = vadd.f32 %v2222_v18, %v2221_v17  ;;  %v620_v20 = vadd.f32 %v2220_v16, %v571_v55  ;;  %v2473_v18 = vld [vmem:[%s3196_s2 + $0xf0] sm:$0xff]  }
 0x12d   :  { %v669_v21 = vadd.f32 %v668_v11, %v620_v20  ;;  %v623_v22 = vadd.f32 %v2223_v19, %v574_v57  ;;  %v2474_v19 = vld [vmem:[%s3196_s2 + $0xf8] sm:$0xff]  }
 0x12e   :  { %v2475_v20 = vld [vmem:[%s3197_s3] ss:$28 sps:$4 sm:$0xff]  }
 0x12f   :  { %v672_v23 = vadd.f32 %v671_v13, %v623_v22  ;;  %v2224_v24 = vpop.f32.mrb[12].mxu0  ;;  %v683_v26 = vmax.f32 %v669_v21, 0.0  ;;  %v2477_v21 = vld [vmem:[%s3197_s3 + $0x4] ss:$28 sps:$4 sm:$0xff]   ;;  %v2480_v22 = vld [vmem:[%s3197_s3 + $0xc] ss:$28 sps:$4 sm:$0xff]  }
 0x130   :  { %v2225_v25 = vpop.f32.mrb[13].mxu0 }
 0x131   :  { %v684_v27 = vmax.f32 %v672_v23, 0.0  ;;  %v2226_v28 = vadd.f32 %v2225_v25, %v2224_v24  ;;  %v2227_v29 = vpop.f32.mrb[14].mxu0  ;;  %v2483_v23 = vld [vmem:[%s3197_s3 + $0x3c] ss:$28 sps:$4 sm:$0xff]   ;;  %v2489_v25 = vld [vmem:[%s3197_s3 + $0x74] ss:$28 sps:$4 sm:$0xff]  }
 0x132   :  { %v2228_v30 = vpop.f32.mrb[15].mxu0  ;;  %v2481_v24 = vld [vmem:[%s3197_s3 + $0x38] ss:$28 sps:$4 sm:$0xff]  }
 0x133   :  { %v687_v31 = vpack.c.bf16 %v684_v27, %v683_v26  ;;  %v628_v32 = vadd.f32 %v2226_v28, %v579_v7  ;;  %v2229_v33 = vadd.f32 %v2228_v30, %v2227_v29  ;;  %v2487_v26 = vld [vmem:[%s3197_s3 + $0x70] ss:$28 sps:$4 sm:$0xff]   ;;  %v2493_v28 = vld [vmem:[%s3197_s3 + $0xa8] ss:$28 sps:$4 sm:$0xff]   ;;  %v2499_v30 = vld [vmem:[%s3197_s3 + $0xe0] ss:$28 sps:$4 sm:$0xff]  }
 0x134   :  { %v2495_v27 = vld [vmem:[%s3197_s3 + $0xac] ss:$28 sps:$4 sm:$0xff]   ;;  %v2501_v29 = vld [vmem:[%s3197_s3 + $0xe4] ss:$28 sps:$4 sm:$0xff]  }
 0x135   :  { %v677_v34 = vadd.f32 %v2287_v10, %v628_v32  ;;  %v631_v35 = vadd.f32 %v2229_v33, %v582_v9  ;;  %2305 = vmatprep.mubr.bf16.mxu1 %v687_v31  ;;  %v2507_v31 = vld [vmem:[%s3197_s3 + $0x11c] ss:$28 sps:$4 sm:$0xff]   ;;  %v2055_v33 = vld [vmem:[%s3198_s4 + $0x3] ss:$0 sm:$0xff] }
 0x136   :  { %v2505_v32 = vld [vmem:[%s3197_s3 + $0x118] ss:$28 sps:$4 sm:$0xff]  }
 0x137   :  { %v680_v36 = vadd.f32 %v2288_v12, %v631_v35  ;;  %v685_v37 = vmax.f32 %v677_v34, 0.0 }
 0x139   :  { %v686_v38 = vmax.f32 %v680_v36, 0.0 }
 0x13b   :  { %v688_v39 = vpack.c.bf16 %v686_v38, %v685_v37 }
 0x13d   :  { %2306 = vmatmul.mubr.bf16.vlgmr.msra.gmra.mrb[12].mxu1 %v688_v39 }
 0x13e   :  { %2330 = vmatpush3.bf16.msra.mxu1 %v2459_v42 }
 0x13f   :  { %2331 = vmatprep.subr.bf16.mxu1 %v2460_v43 }
 0x142   :  { %2332 = vmatpush3.bf16.msra.mxu1 %v2460_v43 }
 0x143   :  { %2333 = vmatprep.subr.bf16.mxu1 %v2461_v44 }
 0x146   :  { %2334 = vmatpush3.bf16.msra.mxu1 %v2461_v44 }
 0x147   :  { %2335 = vmatprep.subr.bf16.mxu1 %v2462_v45 }
 0x14a   :  { %2336 = vmatpush3.bf16.msra.mxu1 %v2462_v45 }
 0x14b   :  { %2337 = vmatprep.subr.bf16.mxu1 %v2463_v46 }
 0x14e   :  { %2338 = vmatpush3.bf16.msra.mxu1 %v2463_v46 }
 0x14f   :  { %2339 = vmatprep.subr.bf16.mxu1 %v2464_v47 }
 0x152   :  { %2340 = vmatpush3.bf16.msra.mxu1 %v2464_v47 }
 0x153   :  { %2341 = vmatprep.subr.bf16.mxu1 %v2465_v63 }
 0x156   :  { %2342 = vmatpush3.bf16.msra.mxu1 %v2465_v63  ;;  %v2519_v63 = vld [vmem:[%s3197_s3 + $0x18c] ss:$28 sps:$4 sm:$0xff]  }
 0x157   :  { %2343 = vmatprep.subr.bf16.mxu1 %v2466_v0 }
 0x15a   :  { %2344 = vmatpush3.bf16.msra.mxu1 %v2466_v0  ;;  %v2522_v0 = vld [vmem:[%s3197_s3 + $0x194] ss:$28 sps:$4 sm:$0xff]  }
 0x15b   :  { %1585 = vmatprep.subr.bf16.mxu1 %v2477_v21 }
 0x210   :  { %v2307_v49 = vpop.f32.mrb[12].mxu1 }
 0x211   :  { %v804_v50 = vadd.f32 %v2307_v49, %v2003_v48  ;;  %v795_v51 = vpop.f32.mrb[13].mxu1  ;;  %v2486_v49 = vld [vmem:[%s3197_s3 + $0x44] ss:$28 sps:$4 sm:$0xff]  }
 0x212   :  { %v796_v52 = vadd.f32 %v2003_v48, %v795_v51  ;;  %v2308_v53 = vpop.f32.mrb[14].mxu1  ;;  %v2492_v51 = vld [vmem:[%s3197_s3 + $0x7c] ss:$28 sps:$4 sm:$0xff]  }
 0x213   :  { %v807_v54 = vadd.f32 %v2308_v53, %v2003_v48  ;;  %v798_v55 = vpop.f32.mrb[15].mxu1  ;;  %v812_v57 = vmax.f32 %v804_v50, 0.0  ;;  %v2484_v50 = vld [vmem:[%s3197_s3 + $0x40] ss:$28 sps:$4 sm:$0xff]   ;;  %v2498_v53 = vld [vmem:[%s3197_s3 + $0xb4] ss:$28 sps:$4 sm:$0xff]  }
 0x214   :  { %v799_v56 = vadd.f32 %v2003_v48, %v798_v55  ;;  %v810_v59 = vmax.f32 %v796_v52, 0.0  ;;  %v2478_v48 = vld [vmem:[%s3197_s3 + $0x8] ss:$28 sps:$4 sm:$0xff]   ;;  %v2490_v52 = vld [vmem:[%s3197_s3 + $0x78] ss:$28 sps:$4 sm:$0xff]  }
 0x215   :  { %v813_v58 = vmax.f32 %v807_v54, 0.0  ;;  %v2496_v54 = vld [vmem:[%s3197_s3 + $0xb0] ss:$28 sps:$4 sm:$0xff]  }
 0x216   :  { %v811_v60 = vmax.f32 %v799_v56, 0.0  ;;  %v2504_v55 = vld [vmem:[%s3197_s3 + $0xec] ss:$28 sps:$4 sm:$0xff]  }
 0x217   :  { %v815_v61 = vpack.c.bf16 %v813_v58, %v812_v57  ;;  %v2502_v56 = vld [vmem:[%s3197_s3 + $0xe8] ss:$28 sps:$4 sm:$0xff]   ;;  %v2508_v58 = vld [vmem:[%s3197_s3 + $0x120] ss:$28 sps:$4 sm:$0xff]  }
 0x218   :  { %v814_v62 = vpack.c.bf16 %v811_v60, %v810_v59  ;;  %v2510_v57 = vld [vmem:[%s3197_s3 + $0x124] ss:$28 sps:$4 sm:$0xff]   ;;  %v2513_v59 = vld [vmem:[%s3197_s3 + $0x154] ss:$28 sps:$4 sm:$0xff]   ;;  %v2516_v60 = vld [vmem:[%s3197_s3 + $0x15c] ss:$28 sps:$4 sm:$0xff]  }
 0x21a   :  { %2325 = vmatprep.mubr.bf16.mxu0 %v814_v62  ;;  %v2514_v62 = vld [vmem:[%s3197_s3 + $0x158] ss:$28 sps:$4 sm:$0xff]  }
 0x21b   :  { %2326 = vmatmul.mubr.bf16.vlgmr.msra.gmra.mrb[16].mxu0 %v815_v61  ;;  %v2511_v61 = vld [vmem:[%s3197_s3 + $0x150] ss:$28 sps:$4 sm:$0xff]  }
 0x21c   :  { %2350 = vmatpush3.bf16.msra.mxu0 %v2467_v1  ;;  %v2517_v1 = vld [vmem:[%s3197_s3 + $0x188] ss:$28 sps:$4 sm:$0xff]  }
 0x21d   :  { %2351 = vmatprep.subr.bf16.mxu0 %v2468_v2 }
 0x220   :  { %2352 = vmatpush3.bf16.msra.mxu0 %v2468_v2  ;;  %v2520_v2 = vld [vmem:[%s3197_s3 + $0x190] ss:$28 sps:$4 sm:$0xff]  }
 0x221   :  { %2353 = vmatprep.subr.bf16.mxu0 %v2469_v3 }
 0x224   :  { %2354 = vmatpush3.bf16.msra.mxu0 %v2469_v3  ;;  %v2525_v3 = vld [vmem:[%s3197_s3 + $0x14] ss:$28 sps:$4 sm:$0xff]  }
 0x225   :  { %2355 = vmatprep.subr.bf16.mxu0 %v2470_v4 }
 0x228   :  { %2356 = vmatpush3.bf16.msra.mxu0 %v2470_v4  ;;  %v2662_v4 = vmov 0  }
 0x229   :  { %2357 = vmatprep.subr.bf16.mxu0 %v2471_v5 }
 0x22c   :  { %2358 = vmatpush3.bf16.msra.mxu0 %v2471_v5  ;;  %v2526_v5 = vld [vmem:[%s3197_s3 + $0x18] ss:$28 sps:$4 sm:$0xff]  }
 0x22d   :  { %2359 = vmatprep.subr.bf16.mxu0 %v2472_v6 }
 0x230   :  { %2360 = vmatpush3.bf16.msra.mxu0 %v2472_v6  ;;  %v2081_v6 = vld [vmem:[%s3198_s4 + $0x4] ss:$0 sm:$0xff] }
 0x231   :  { %2361 = vmatprep.subr.bf16.mxu0 %v2473_v18 }
 0x234   :  { %2362 = vmatpush3.bf16.msra.mxu0 %v2473_v18 }
 0x235   :  { %2363 = vmatprep.subr.bf16.mxu0 %v2474_v19 }
 0x238   :  { %2364 = vmatpush3.bf16.msra.mxu0 %v2474_v19 }
 0x239   :  { %1638 = vmatprep.subr.bf16.mxu0 %v2480_v22  ;;  %v2529_v22 = vld [vmem:[%s3197_s3 + $0x4c] ss:$28 sps:$4 sm:$0xff]  }
 0x2ee   :  { %v2327_v7 = vpop.f32.mrb[16].mxu0 }
 0x2ef   :  { %v923_v9 = vpop.f32.mrb[17].mxu0  ;;  %v932_v11 = vadd.f32 %v2327_v7, %v2029_v8 }
 0x2f0   :  { %v2328_v10 = vpop.f32.mrb[18].mxu0  ;;  %v924_v14 = vadd.f32 %v2029_v8, %v923_v9 }
 0x2f1   :  { %v935_v12 = vadd.f32 %v2328_v10, %v2029_v8  ;;  %v926_v13 = vpop.f32.mrb[19].mxu0 }
 0x2f2   :  { %v927_v15 = vadd.f32 %v2029_v8, %v926_v13 }
 0x2f3   :  { %v939_v16 = vpack.c.bf16 %v935_v12, %v932_v11 }
 0x2f4   :  { %v938_v17 = vpack.c.bf16 %v927_v15, %v924_v14 }
 0x2f6   :  { %2345 = vmatprep.mubr.bf16.mxu1 %v938_v17 }
 0x2f7   :  { %2346 = vmatmul.mubr.bf16.vlgmr.msra.gmra.mrb[16].mxu1 %v939_v16 }
 0x2f8   :  { %1586 = vmatpush1.bf16.msra.mxu1 %v2475_v20  ;;  %1617 = vmatprep.mubr.bf16.mxu1 %v2662_v4  ;;  %v2523_v20 = vld [vmem:[%s3197_s3 + $0x10] ss:$28 sps:$4 sm:$0xff]  }
 0x2f9   :  { %1587 = vmatprep.subr.bf16.mxu1 %v2483_v23  ;;  %v2530_v23 = vld [vmem:[%s3197_s3 + $0x50] ss:$28 sps:$4 sm:$0xff]  }
 0x2fc   :  { %1588 = vmatpush1.bf16.msra.mxu1 %v2481_v24  ;;  %v2527_v24 = vld [vmem:[%s3197_s3 + $0x48] ss:$28 sps:$4 sm:$0xff]  }
 0x2fd   :  { %1589 = vmatprep.subr.bf16.mxu1 %v2489_v25  ;;  %v2533_v25 = vld [vmem:[%s3197_s3 + $0x84] ss:$28 sps:$4 sm:$0xff]  }
 0x300   :  { %1590 = vmatpush1.bf16.msra.mxu1 %v2487_v26  ;;  %v2534_v26 = vld [vmem:[%s3197_s3 + $0x88] ss:$28 sps:$4 sm:$0xff]  }
 0x301   :  { %1591 = vmatprep.subr.bf16.mxu1 %v2495_v27  ;;  %v2531_v27 = vld [vmem:[%s3197_s3 + $0x80] ss:$28 sps:$4 sm:$0xff]  }
 0x304   :  { %1592 = vmatpush1.bf16.msra.mxu1 %v2493_v28  ;;  %v2537_v28 = vld [vmem:[%s3197_s3 + $0xbc] ss:$28 sps:$4 sm:$0xff]  }
 0x305   :  { %1593 = vmatprep.subr.bf16.mxu1 %v2501_v29  ;;  %v2538_v29 = vld [vmem:[%s3197_s3 + $0xc0] ss:$28 sps:$4 sm:$0xff]  }
 0x308   :  { %1594 = vmatpush1.bf16.msra.mxu1 %v2499_v30  ;;  %v2535_v30 = vld [vmem:[%s3197_s3 + $0xb8] ss:$28 sps:$4 sm:$0xff]  }
 0x309   :  { %1595 = vmatprep.subr.bf16.mxu1 %v2507_v31  ;;  %v2541_v31 = vld [vmem:[%s3197_s3 + $0xf4] ss:$28 sps:$4 sm:$0xff]  }
 0x30c   :  { %1596 = vmatpush1.bf16.msra.mxu1 %v2505_v32  ;;  %v2542_v32 = vld [vmem:[%s3197_s3 + $0xf8] ss:$28 sps:$4 sm:$0xff]  }
 0x30d   :  { %1597 = vmatprep.subr.bf16.mxu1 %v2513_v59 }
 0x310   :  { %1598 = vmatpush1.bf16.msra.mxu1 %v2511_v61 }
 0x311   :  { %1599 = vmatprep.subr.bf16.mxu1 %v2519_v63 }
 0x314   :  { %1600 = vmatpush1.bf16.msra.mxu1 %v2517_v1 }
 0x315   :  { %1691 = vmatprep.subr.bf16.mxu1 %v2525_v3 }
 0x3ca   :  { %v2347_v34 = vpop.f32.mrb[16].mxu1 }
 0x3cb   :  { %v1056_v35 = vadd.f32 %v2347_v34, %v2055_v33  ;;  %v1047_v36 = vpop.f32.mrb[17].mxu1  ;;  %v2545_v34 = vld [vmem:[%s3197_s3 + $0x12c] ss:$28 sps:$4 sm:$0xff]  }
 0x3cc   :  { %v1048_v37 = vadd.f32 %v2055_v33, %v1047_v36  ;;  %v2348_v38 = vpop.f32.mrb[18].mxu1  ;;  %v2543_v36 = vld [vmem:[%s3197_s3 + $0x128] ss:$28 sps:$4 sm:$0xff]  }
 0x3cd   :  { %v1059_v39 = vadd.f32 %v2348_v38, %v2055_v33  ;;  %v1050_v40 = vpop.f32.mrb[19].mxu1  ;;  %v1064_v42 = vmax.f32 %v1056_v35, 0.0  ;;  %v2546_v35 = vld [vmem:[%s3197_s3 + $0x130] ss:$28 sps:$4 sm:$0xff]   ;;  %v2550_v38 = vld [vmem:[%s3197_s3 + $0x168] ss:$28 sps:$4 sm:$0xff]  }
 0x3ce   :  { %v1051_v41 = vadd.f32 %v2055_v33, %v1050_v40  ;;  %v1062_v44 = vmax.f32 %v1048_v37, 0.0  ;;  %v2539_v33 = vld [vmem:[%s3197_s3 + $0xf0] ss:$28 sps:$4 sm:$0xff]   ;;  %v2549_v37 = vld [vmem:[%s3197_s3 + $0x164] ss:$28 sps:$4 sm:$0xff]  }
 0x3cf   :  { %v1065_v43 = vmax.f32 %v1059_v39, 0.0  ;;  %v2547_v39 = vld [vmem:[%s3197_s3 + $0x160] ss:$28 sps:$4 sm:$0xff]  }
 0x3d0   :  { %v1063_v45 = vmax.f32 %v1051_v41, 0.0  ;;  %v2553_v40 = vld [vmem:[%s3197_s3 + $0x19c] ss:$28 sps:$4 sm:$0xff]  }
 0x3d1   :  { %v1067_v46 = vpack.c.bf16 %v1065_v43, %v1064_v42  ;;  %v2554_v41 = vld [vmem:[%s3197_s3 + $0x1a0] ss:$28 sps:$4 sm:$0xff]   ;;  %v2551_v42 = vld [vmem:[%s3197_s3 + $0x198] ss:$28 sps:$4 sm:$0xff]   ;;  %v1262_v43 = vlaneseq }
 0x3d2   :  { %v1066_v47 = vpack.c.bf16 %v1063_v45, %v1062_v44 }
 0x3d3   :  { %v3154_v44 = vshrl.u32 %v1262_v43, 7 }
 0x3d4   :  { %2365 = vmatprep.mubr.bf16.mxu0 %v1066_v47  ;;  %v3161_v47 = vld [vmem:[%s3199_s5] sm:$0x7f]  ;;  %s2663_s5 = smov [#allocation5]  }
 0x3d5   :  { %2366 = vmatmul.mubr.bf16.vlgmr.msra.gmra.mrb[20].mxu0 %v1067_v46  ;;  %v1264_v45 = vsub.s32 0, %v3154_v44  ;;  %v1272_v46 = vsub.s32 2, %v3154_v44  ;;  %s1938_s27 = sshll.u32 %s2663_s5, 4  ;;  %s1939_s27 = int_to_ptr.vmem [resolvable:$true] %s1938_s27 }
 0x3d6   :  { %1639 = vmatpush1.bf16.msra.mxu0 %v2478_v48  ;;  %1670 = vmatprep.mubr.bf16.mxu0 %v2662_v4  ;;  %v1268_v48 = vsub.s32 1, %v3154_v44  ;;  %s2633_s28 = scalar_lea.vmem %s1939_s27, 3584  ;;  %p2638_p9 = scmp.lt.s32.totalorder %s1939_s27, %s1939_s27 }
 0x3d7   :  { %1640 = vmatprep.subr.bf16.mxu0 %v2486_v49  ;;  %v1276_v49 = vsub.s32 3, %v3154_v44  ;;  %p2634_p8 = scmp.ne.s32.totalorder %s1939_s27, %s2633_s28  ;;  %p2639_p10 = scmp.lt.s32.totalorder %s2633_s28, %s2633_s28 }
 0x3d9   :  { %p2640_p11 = por %p2639_p10, %p2638_p9 }
 0x3da   :  { %1641 = vmatpush1.bf16.msra.mxu0 %v2484_v50  ;;  %v1265_v50 = vrot.slane %v3161_v47, %v1264_v45 }
 0x3db   :  { %1642 = vmatprep.subr.bf16.mxu0 %v2492_v51  ;;  %v1273_v51 = vrot.slane %v3161_v47, %v1272_v46  ;;  %p2641_p12 = pnand %p2640_p11, %p2634_p8 }
 0x3de   :  { %1643 = vmatpush1.bf16.msra.mxu0 %v2490_v52  ;;  %v1269_v52 = vrot.slane %v3161_v47, %v1268_v48 }
 0x3df   :  { %1644 = vmatprep.subr.bf16.mxu0 %v2498_v53  ;;  %v1277_v53 = vrot.slane %v3161_v47, %v1276_v49 }
 0x3e2   :  { %1645 = vmatpush1.bf16.msra.mxu0 %v2496_v54 }
 0x3e3   :  { %1646 = vmatprep.subr.bf16.mxu0 %v2504_v55 }
 0x3e6   :  { %1647 = vmatpush1.bf16.msra.mxu0 %v2502_v56 }
 0x3e7   :  { %1648 = vmatprep.subr.bf16.mxu0 %v2510_v57 }
 0x3ea   :  { %1649 = vmatpush1.bf16.msra.mxu0 %v2508_v58 }
 0x3eb   :  { %1650 = vmatprep.subr.bf16.mxu0 %v2516_v60 }
 0x3ee   :  { %1651 = vmatpush1.bf16.msra.mxu0 %v2514_v62 }
 0x3ef   :  { %1652 = vmatprep.subr.bf16.mxu0 %v2522_v0 }
 0x3f2   :  { %1653 = vmatpush1.bf16.msra.mxu0 %v2520_v2 }
 0x3f3   :  { %2369 = vmatprep.subr.bf16.mxu0 %v2526_v5 }
 0x4a8   :  { %v2367_v7 = vpop.f32.mrb[20].mxu0 }
 0x4a9   :  { %v1184_v8 = vadd.f32 %v2367_v7, %v2081_v6  ;;  %v1175_v9 = vpop.f32.mrb[21].mxu0 }
 0x4aa   :  { %v1176_v10 = vadd.f32 %v2081_v6, %v1175_v9  ;;  %v2368_v11 = vpop.f32.mrb[22].mxu0 }
 0x4ab   :  { %v1187_v12 = vadd.f32 %v2368_v11, %v2081_v6  ;;  %v1178_v13 = vpop.f32.mrb[23].mxu0  ;;  %v1192_v15 = vmax.f32 %v1184_v8, 0.0 }
 0x4ac   :  { %v1179_v14 = vadd.f32 %v2081_v6, %v1178_v13  ;;  %v1190_v17 = vmax.f32 %v1176_v10, 0.0 }
 0x4ad   :  { %v1193_v16 = vmax.f32 %v1187_v12, 0.0 }
 0x4ae   :  { %v1191_v18 = vmax.f32 %v1179_v14, 0.0 }
 0x4af   :  { %v3078_v19 = vpack.c.bf16 %v1193_v16, %v1192_v15 }
 0x4b0   :  { %v1194_v21 = vpack.c.bf16 %v1191_v18, %v1190_v17 }
 0x4b2   :  { %1618 = vmatmul.mubr.bf16.vlgmr.msra.gmra.mrb[20].mxu1 %v1194_v21  ;;  %1671 = vmatmul.mubr.bf16.vlgmr.msra.gmra.mrb[24].mxu0 %v1194_v21 }
 0x4b3   :  { %1692 = vmatpush1.bf16.msra.mxu1 %v2523_v20  ;;  %2370 = vmatpush3.bf16.msra.mxu0 %v2526_v5 }
 0x4b4   :  { %1693 = vmatprep.subr.bf16.mxu1 %v2529_v22  ;;  %2371 = vmatprep.subr.bf16.mxu0 %v2530_v23 }
 0x4b5   :  { %1627 = vmatprep.mubr.bf16.mxu1 %v2662_v4  ;;  %1680 = vmatprep.mubr.bf16.mxu0 %v2662_v4 }
 0x4b7   :  { %1694 = vmatpush1.bf16.msra.mxu1 %v2527_v24  ;;  %2372 = vmatpush3.bf16.msra.mxu0 %v2530_v23 }
 0x4b8   :  { %1695 = vmatprep.subr.bf16.mxu1 %v2533_v25  ;;  %2373 = vmatprep.subr.bf16.mxu0 %v2534_v26 }
 0x4ba   :  { %1628 = vmatmul.mubr.bf16.gmra.mrb[24].mxu1 %v3078_v19  ;;  %1681 = vmatmul.mubr.bf16.gmra.mrb[28].mxu0 %v3078_v19 }
 0x4bb   :  { %1696 = vmatpush1.bf16.msra.mxu1 %v2531_v27  ;;  %2374 = vmatpush3.bf16.msra.mxu0 %v2534_v26 }
 0x4bc   :  { %2385 = vmatprep.mubr.bf16.mxu0 %v1194_v21  ;;  %1697 = vmatprep.subr.bf16.mxu1 %v2537_v28 }
 0x4bd   :  { %2375 = vmatprep.subr.bf16.mxu0 %v2538_v29  ;;  %1723 = vmatprep.mubr.bf16.mxu1 %v2662_v4 }
 0x4bf   :  { %1698 = vmatpush1.bf16.msra.mxu1 %v2535_v30  ;;  %2376 = vmatpush3.bf16.msra.mxu0 %v2538_v29 }
 0x4c0   :  { %1699 = vmatprep.subr.bf16.mxu1 %v2541_v31  ;;  %2377 = vmatprep.subr.bf16.mxu0 %v2542_v32 }
 0x4c3   :  { %1700 = vmatpush1.bf16.msra.mxu1 %v2539_v33  ;;  %2378 = vmatpush3.bf16.msra.mxu0 %v2542_v32 }
 0x4c4   :  { %1701 = vmatprep.subr.bf16.mxu1 %v2545_v34  ;;  %2379 = vmatprep.subr.bf16.mxu0 %v2546_v35 }
 0x4c7   :  { %1702 = vmatpush1.bf16.msra.mxu1 %v2543_v36  ;;  %2380 = vmatpush3.bf16.msra.mxu0 %v2546_v35 }
 0x4c8   :  { %1703 = vmatprep.subr.bf16.mxu1 %v2549_v37  ;;  %2381 = vmatprep.subr.bf16.mxu0 %v2550_v38 }
 0x4cb   :  { %1704 = vmatpush1.bf16.msra.mxu1 %v2547_v39  ;;  %2382 = vmatpush3.bf16.msra.mxu0 %v2550_v38 }
 0x4cc   :  { %1705 = vmatprep.subr.bf16.mxu1 %v2553_v40  ;;  %2383 = vmatprep.subr.bf16.mxu0 %v2554_v41 }
 0x4cf   :  { %1706 = vmatpush1.bf16.msra.mxu1 %v2551_v42  ;;  %2384 = vmatpush3.bf16.msra.mxu0 %v2554_v41 }
 0x4d2   :  { %1724 = vmatmul.mubr.bf16.vlgmr.msra.gmra.mrb[28].mxu1 %v1194_v21  ;;  %2386 = vmatmul.mubr.bf16.vlgmr.msra.gmra.mrb[32].mxu0 %v3078_v19 }
 0x4d3   :  { %1733 = vmatprep.mubr.bf16.mxu1 %v2662_v4 }
 0x4da   :  { %1734 = vmatmul.mubr.bf16.gmra.mrb[32].mxu1 %v3078_v19 }
 0x585   :  { %v1619_v54 = vpop.f32.mrb[20].mxu1  ;;  %v1672_v55 = vpop.f32.mrb[24].mxu0 }
 0x586   :  { %v1620_v56 = vadd.f32 %v1619_v54, %v1265_v50  ;;  %v1673_v57 = vadd.f32 %v1672_v55, %v1273_v51  ;;  %v1621_v58 = vpop.f32.mrb[21].mxu1  ;;  %v1674_v59 = vpop.f32.mrb[25].mxu0 }
 0x587   :  { %v1622_v60 = vadd.f32 %v1621_v58, %v1269_v52  ;;  %v1675_v61 = vadd.f32 %v1674_v59, %v1277_v53  ;;  %v1623_v62 = vpop.f32.mrb[22].mxu1  ;;  %v1676_v63 = vpop.f32.mrb[26].mxu0 }
 0x588   :  { %v1793_v0 = vmul.f32 0.5, %v1620_v56  ;;  %v1795_v1 = vmul.f32 0.5, %v1673_v57  ;;  %v1624_v2 = vadd.f32 %v1623_v62, %v1265_v50  ;;  %v1677_v3 = vadd.f32 %v1676_v63, %v1273_v51  ;;  %v1625_v4 = vpop.f32.mrb[23].mxu1  ;;  %v1678_v5 = vpop.f32.mrb[27].mxu0 }
 0x589   :  { %v1794_v6 = vmul.f32 0.5, %v1622_v60  ;;  %v1796_v7 = vmul.f32 0.5, %v1675_v61  ;;  %v1626_v8 = vadd.f32 %v1625_v4, %v1269_v52  ;;  %v1679_v9 = vadd.f32 %v1678_v5, %v1277_v53 }
 0x58a   :  { %2555 = vtanh.f32 %v1793_v0  ;;  %v1800_v10 = vmul.f32 0.5, %v1624_v2  ;;  %v1802_v11 = vmul.f32 0.5, %v1677_v3  ;;  %v1280_v5 = vsub.s32 4, %v3154_v44 }
 0x58b   :  { %2557 = vtanh.f32 %v1795_v1  ;;  %v1801_v12 = vmul.f32 0.5, %v1626_v8  ;;  %v1803_v13 = vmul.f32 0.5, %v1679_v9 }
 0x58c   :  { %2559 = vtanh.f32 %v1794_v6  ;;  %v1288_v6 = vsub.s32 6, %v3154_v44 }
 0x58d   :  { %2561 = vtanh.f32 %v1796_v7  ;;  %v1629_v14 = vpop.f32.mrb[24].mxu1  ;;  %v1682_v15 = vpop.f32.mrb[28].mxu0 }
 0x58e   :  { %2563 = vtanh.f32 %v1800_v10  ;;  %v1630_v16 = vadd.f32 %v1629_v14, %v1265_v50  ;;  %v1683_v17 = vadd.f32 %v1682_v15, %v1273_v51  ;;  %v1631_v18 = vpop.f32.mrb[25].mxu1  ;;  %v1684_v19 = vpop.f32.mrb[29].mxu0  ;;  %v1284_v10 = vsub.s32 5, %v3154_v44 }
 0x58f   :  { %2565 = vtanh.f32 %v1802_v11  ;;  %v1632_v20 = vadd.f32 %v1631_v18, %v1269_v52  ;;  %v1685_v21 = vadd.f32 %v1684_v19, %v1277_v53  ;;  %v1633_v22 = vpop.f32.mrb[26].mxu1  ;;  %v1686_v23 = vpop.f32.mrb[30].mxu0 }
 0x590   :  { %2567 = vtanh.f32 %v1801_v12  ;;  %v1807_v24 = vmul.f32 0.5, %v1630_v16  ;;  %v1809_v25 = vmul.f32 0.5, %v1683_v17  ;;  %v1634_v26 = vadd.f32 %v1633_v22, %v1265_v50  ;;  %v1635_v27 = vpop.f32.mrb[27].mxu1  ;;  %v1688_v28 = vpop.f32.mrb[31].mxu0 }
 0x591   :  { %2569 = vtanh.f32 %v1803_v13  ;;  %v1808_v29 = vmul.f32 0.5, %v1632_v20  ;;  %v1810_v30 = vmul.f32 0.5, %v1685_v21  ;;  %v1687_v31 = vadd.f32 %v1686_v23, %v1273_v51 }
 0x592   :  { %2571 = vtanh.f32 %v1807_v24  ;;  %v1814_v32 = vmul.f32 0.5, %v1634_v26  ;;  %v1636_v33 = vadd.f32 %v1635_v27, %v1269_v52  ;;  %v1689_v34 = vadd.f32 %v1688_v28, %v1277_v53 }
 0x593   :  { %2573 = vtanh.f32 %v1809_v25  ;;  %v1816_v35 = vmul.f32 0.5, %v1687_v31  ;;  %v1281_v20 = vrot.slane %v3161_v47, %v1280_v5  ;;  %v1289_v21 = vrot.slane %v3161_v47, %v1288_v6 }
 0x594   :  { %v2556_v36 = vpop.eup %2555  ;;  %2575 = vtanh.f32 %v1808_v29  ;;  %v1815_v37 = vmul.f32 0.5, %v1636_v33  ;;  %v1817_v40 = vmul.f32 0.5, %v1689_v34  ;;  %v1285_v24 = vrot.slane %v3161_v47, %v1284_v10 }
 0x595   :  { %v2558_v38 = vpop.eup %2557  ;;  %v1849_v39 = vadd.f32 1.0, %v2556_v36  ;;  %2577 = vtanh.f32 %v1810_v30 }
 0x596   :  { %v2560_v41 = vpop.eup %2559  ;;  %v1851_v42 = vadd.f32 1.0, %v2558_v38  ;;  %2579 = vtanh.f32 %v1814_v32 }
 0x597   :  { %v2562_v43 = vpop.eup %2561  ;;  %v1877_v45 = vmul.f32 0.5, %v1849_v39  ;;  %v1850_v46 = vadd.f32 1.0, %v2560_v41  ;;  %2581 = vtanh.f32 %v1816_v35 }
 0x598   :  { %v2564_v48 = vpop.eup %2563  ;;  %v1879_v49 = vmul.f32 0.5, %v1851_v42  ;;  %v1852_v50 = vadd.f32 1.0, %v2562_v43  ;;  %2583 = vtanh.f32 %v1815_v37 }
 0x599   :  { %v2566_v51 = vpop.eup %2565  ;;  %1905 = vst [vmem:[#allocation5] sm:$0xff] %v1877_v45  ;;  %v1878_v52 = vmul.f32 0.5, %v1850_v46  ;;  %v1856_v53 = vadd.f32 1.0, %v2564_v48  ;;  %2585 = vtanh.f32 %v1817_v40 }
 0x59a   :  { %v2568_v54 = vpop.eup %2567  ;;  %1907 = vst [vmem:[#allocation5 + $0x10] sm:$0xff] %v1879_v49  ;;  %v1880_v55 = vmul.f32 0.5, %v1852_v50  ;;  %v1858_v56 = vadd.f32 1.0, %v2566_v51 }
 0x59b   :  { %v2570_v57 = vpop.eup %2569  ;;  %1906 = vst [vmem:[#allocation5 + $0x8] sm:$0xff] %v1878_v52  ;;  %v1884_v58 = vmul.f32 0.5, %v1856_v53  ;;  %v1857_v59 = vadd.f32 1.0, %v2568_v54 }
 0x59c   :  { %v2572_v60 = vpop.eup %2571  ;;  %1908 = vst [vmem:[#allocation5 + $0x18] sm:$0xff] %v1880_v55  ;;  %v1886_v61 = vmul.f32 0.5, %v1858_v56  ;;  %v1859_v62 = vadd.f32 1.0, %v2570_v57 }
 0x59d   :  { %v2574_v63 = vpop.eup %2573  ;;  %1912 = vst [vmem:[#allocation5 + $0x38] sm:$0xff] %v1884_v58  ;;  %v1885_v0 = vmul.f32 0.5, %v1857_v59  ;;  %v1863_v1 = vadd.f32 1.0, %v2572_v60 }
 0x59e   :  { %v2576_v2 = vpop.eup %2575  ;;  %1914 = vst [vmem:[#allocation5 + $0x48] sm:$0xff] %v1886_v61  ;;  %v1887_v3 = vmul.f32 0.5, %v1859_v62  ;;  %v1865_v4 = vadd.f32 1.0, %v2574_v63 }
 0x59f   :  { %v2578_v7 = vpop.eup %2577  ;;  %1913 = vst [vmem:[#allocation5 + $0x40] sm:$0xff] %v1885_v0  ;;  %v1891_v8 = vmul.f32 0.5, %v1863_v1  ;;  %v1864_v9 = vadd.f32 1.0, %v2576_v2 }
 0x5a0   :  { %v2580_v11 = vpop.eup %2579  ;;  %1915 = vst [vmem:[#allocation5 + $0x50] sm:$0xff] %v1887_v3  ;;  %v1893_v12 = vmul.f32 0.5, %v1865_v4  ;;  %v1866_v13 = vadd.f32 1.0, %v2578_v7 }
 0x5a1   :  { %v2582_v14 = vpop.eup %2581  ;;  %1919 = vst [vmem:[#allocation5 + $0x70] sm:$0xff] %v1891_v8  ;;  %v1892_v15 = vmul.f32 0.5, %v1864_v9  ;;  %v1870_v16 = vadd.f32 1.0, %v2580_v11 }
 0x5a2   :  { %v2584_v17 = vpop.eup %2583  ;;  %1921 = vst [vmem:[#allocation5 + $0x80] sm:$0xff] %v1893_v12  ;;  %v1894_v18 = vmul.f32 0.5, %v1866_v13  ;;  %v1872_v19 = vadd.f32 1.0, %v2582_v14 }
 0x5a3   :  { %v2586_v22 = vpop.eup %2585  ;;  %1920 = vst [vmem:[#allocation5 + $0x78] sm:$0xff] %v1892_v15  ;;  %v1898_v23 = vmul.f32 0.5, %v1870_v16  ;;  %v1871_v44 = vadd.f32 1.0, %v2584_v17 }
 0x5a4   :  { %1922 = vst [vmem:[#allocation5 + $0x88] sm:$0xff] %v1894_v18  ;;  %v1900_v25 = vmul.f32 0.5, %v1872_v19  ;;  %v1873_v26 = vadd.f32 1.0, %v2586_v22 }
 0x5a5   :  { %1926 = vst [vmem:[#allocation5 + $0xa8] sm:$0xff] %v1898_v23  ;;  %v1899_v27 = vmul.f32 0.5, %v1871_v44  ;;  %v1725_v28 = vpop.f32.mrb[28].mxu1  ;;  %v2387_v29 = vpop.f32.mrb[32].mxu0 }
 0x5a6   :  { %1928 = vst [vmem:[#allocation5 + $0xb8] sm:$0xff] %v1900_v25  ;;  %v1901_v30 = vmul.f32 0.5, %v1873_v26  ;;  %v1726_v31 = vadd.f32 %v1725_v28, %v1281_v20  ;;  %v1787_v32 = vadd.f32 %v2387_v29, %v1289_v21  ;;  %v1727_v33 = vpop.f32.mrb[29].mxu1  ;;  %v1778_v34 = vpop.f32.mrb[33].mxu0 }
 0x5a7   :  { %1927 = vst [vmem:[#allocation5 + $0xb0] sm:$0xff] %v1899_v27  ;;  %v1728_v35 = vadd.f32 %v1727_v33, %v1285_v24  ;;  %v1779_v36 = vadd.f32 %v1778_v34, %v1289_v21  ;;  %v1729_v37 = vpop.f32.mrb[30].mxu1  ;;  %v2388_v38 = vpop.f32.mrb[34].mxu0 }
 0x5a8   :  { %1929 = vst [vmem:[#allocation5 + $0xc0] sm:$0xff] %v1901_v30  ;;  %v1797_v47 = vmul.f32 0.5, %v1726_v31  ;;  %v1813_v39 = vmul.f32 0.5, %v1787_v32  ;;  %v1730_v40 = vadd.f32 %v1729_v37, %v1281_v20  ;;  %v1790_v41 = vadd.f32 %v2388_v38, %v1289_v21  ;;  %v1731_v42 = vpop.f32.mrb[31].mxu1  ;;  %v1781_v43 = vpop.f32.mrb[35].mxu0 }
 0x5a9   :  { %v1798_v45 = vmul.f32 0.5, %v1728_v35  ;;  %v1799_v46 = vmul.f32 0.5, %v1779_v36  ;;  %v1732_v48 = vadd.f32 %v1731_v42, %v1285_v24  ;;  %v1782_v49 = vadd.f32 %v1781_v43, %v1289_v21 }
 0x5aa   :  { %2587 = vtanh.f32 %v1797_v47  ;;  %v1804_v50 = vmul.f32 0.5, %v1730_v40  ;;  %v1820_v51 = vmul.f32 0.5, %v1790_v41 }
 0x5ab   :  { %2589 = vtanh.f32 %v1813_v39  ;;  %v1805_v52 = vmul.f32 0.5, %v1732_v48  ;;  %v1806_v53 = vmul.f32 0.5, %v1782_v49 }
 0x5ac   :  { %2591 = vtanh.f32 %v1798_v45 }
 0x5ad   :  { %2593 = vtanh.f32 %v1799_v46  ;;  %v1735_v54 = vpop.f32.mrb[32].mxu1 }
 0x5ae   :  { %2595 = vtanh.f32 %v1804_v50  ;;  %v1736_v55 = vadd.f32 %v1735_v54, %v1281_v20  ;;  %v1737_v56 = vpop.f32.mrb[33].mxu1 }
 0x5af   :  { %2597 = vtanh.f32 %v1820_v51  ;;  %v1738_v57 = vadd.f32 %v1737_v56, %v1285_v24  ;;  %v1739_v58 = vpop.f32.mrb[34].mxu1 }
 0x5b0   :  { %2599 = vtanh.f32 %v1805_v52  ;;  %v1811_v59 = vmul.f32 0.5, %v1736_v55  ;;  %v1740_v60 = vadd.f32 %v1739_v58, %v1281_v20  ;;  %v1741_v61 = vpop.f32.mrb[35].mxu1 }
 0x5b1   :  { %2601 = vtanh.f32 %v1806_v53  ;;  %v1812_v62 = vmul.f32 0.5, %v1738_v57  ;;  %v1742_v63 = vadd.f32 %v1741_v61, %v1285_v24 }
 0x5b2   :  { %2603 = vtanh.f32 %v1811_v59  ;;  %v1818_v0 = vmul.f32 0.5, %v1740_v60 }
 0x5b3   :  { %2605 = vtanh.f32 %v1812_v62  ;;  %v1819_v1 = vmul.f32 0.5, %v1742_v63 }
 0x5b4   :  { %v2588_v2 = vpop.eup %2587  ;;  %2607 = vtanh.f32 %v1818_v0 }
 0x5b5   :  { %v2590_v3 = vpop.eup %2589  ;;  %v1853_v4 = vadd.f32 1.0, %v2588_v2  ;;  %2609 = vtanh.f32 %v1819_v1 }
 0x5b6   :  { %v2592_v5 = vpop.eup %2591  ;;  %v1869_v6 = vadd.f32 1.0, %v2590_v3 }
 0x5b7   :  { %v2594_v7 = vpop.eup %2593  ;;  %v1881_v8 = vmul.f32 0.5, %v1853_v4  ;;  %v1854_v9 = vadd.f32 1.0, %v2592_v5 }
 0x5b8   :  { %v2596_v10 = vpop.eup %2595  ;;  %v1897_v11 = vmul.f32 0.5, %v1869_v6  ;;  %v1855_v12 = vadd.f32 1.0, %v2594_v7 }
 0x5b9   :  { %v2598_v13 = vpop.eup %2597  ;;  %1909 = vst [vmem:[#allocation5 + $0x20] sm:$0xff] %v1881_v8  ;;  %v1882_v14 = vmul.f32 0.5, %v1854_v9  ;;  %v1860_v15 = vadd.f32 1.0, %v2596_v10 }
 0x5ba   :  { %v2600_v16 = vpop.eup %2599  ;;  %1925 = vst.msk [vmem:[#allocation5 + $0xa0] sm:$0xff] %vm480_vm0, %v1897_v11  ;;  %v1883_v17 = vmul.f32 0.5, %v1855_v12  ;;  %v1876_v18 = vadd.f32 1.0, %v2598_v13 }
 0x5bb   :  { %v2602_v19 = vpop.eup %2601  ;;  %1910 = vst [vmem:[#allocation5 + $0x28] sm:$0xff] %v1882_v14  ;;  %v1888_v20 = vmul.f32 0.5, %v1860_v15  ;;  %v1861_v21 = vadd.f32 1.0, %v2600_v16 }
 0x5bc   :  { %v2604_v22 = vpop.eup %2603  ;;  %1911 = vst.msk [vmem:[#allocation5 + $0x30] sm:$0xff] %vm480_vm0, %v1883_v17  ;;  %v1904_v23 = vmul.f32 0.5, %v1876_v18  ;;  %v1862_v44 = vadd.f32 1.0, %v2602_v19 }
 0x5bd   :  { %v2606_v24 = vpop.eup %2605  ;;  %1916 = vst [vmem:[#allocation5 + $0x58] sm:$0xff] %v1888_v20  ;;  %v1889_v25 = vmul.f32 0.5, %v1861_v21  ;;  %v1867_v26 = vadd.f32 1.0, %v2604_v22 }
 0x5be   :  { %v2608_v27 = vpop.eup %2607  ;;  %1932 = vst.msk [vmem:[#allocation5 + $0xd8] sm:$0xff] %vm480_vm0, %v1904_v23  ;;  %v1890_v28 = vmul.f32 0.5, %v1862_v44  ;;  %v1868_v29 = vadd.f32 1.0, %v2606_v24 }
 0x5bf   :  { %v2610_v30 = vpop.eup %2609  ;;  %1917 = vst [vmem:[#allocation5 + $0x60] sm:$0xff] %v1889_v25  ;;  %v1895_v31 = vmul.f32 0.5, %v1867_v26  ;;  %v1874_v32 = vadd.f32 1.0, %v2608_v27 }
 0x5c0   :  { %1918 = vst.msk [vmem:[#allocation5 + $0x68] sm:$0xff] %vm480_vm0, %v1890_v28  ;;  %v1896_v33 = vmul.f32 0.5, %v1868_v29  ;;  %v1875_v34 = vadd.f32 1.0, %v2610_v30 }
 0x5c1   :  { %1923 = vst [vmem:[#allocation5 + $0x90] sm:$0xff] %v1895_v31  ;;  %v1902_v35 = vmul.f32 0.5, %v1874_v32 }
 0x5c2   :  { %1924 = vst [vmem:[#allocation5 + $0x98] sm:$0xff] %v1896_v33  ;;  %v1903_v36 = vmul.f32 0.5, %v1875_v34 }
 0x5c3   :  { %1930 = vst [vmem:[#allocation5 + $0xc8] sm:$0xff] %v1902_v35 }
 0x5c4   :  { %1931 = vst [vmem:[#allocation5 + $0xd0] sm:$0xff] %v1903_v36 }
 0x5c5   :  { %2644 = shalt.err (!%p2641_p12)
}
 0x5c6   :  { %s2645_s9 = scalar_lea.hbm %s3200_s6, 3584 }
 0x5c7   :  { %p2646_p13 = scmp.ne.s32.totalorder %s3200_s6, %s2645_s9  ;;  %p2649_p0 = scmp.lt.u32.totalorder %s2645_s9, %s3200_s6 }
 0x5c9   :  { %p2651_p1 = pnand %p2649_p0, %p2646_p13 }
 0x5cb   :  { %2654 = shalt.err (!%p2651_p1)
}
 0x5cc   :  { %1944 = dma.vmem_to_hbm [thread:$0]  %s1939_s27, 3584, %s3200_s6, [#allocation4], %s2660_s7, %s2660_s7, %s2661_s8  }
 0x5cd   :  { %2657 = dma.done.wait [#allocation4], 3584  }
 0x5ce   :  { %2658 = vsyncadd [#allocation4], 4294963712 }
 0x5cf   :  { %1948 = vsyncpa [#allocation3], 1 }
 0x5d0   :  { %1949 = vsyncpa [#allocation4], 1 }

</bundles_post_ra>
